<compile_context>
chip_gen: v7x
topology: tpu7x:2x2x1
jax: 0.10.0
libtpu: 0.0.40
codegen_flags: <defaults>
</compile_context>

<pallas_src>
import functools

import jax
import jax.numpy as jnp
from jax.experimental import pallas as pl
from jax.experimental.pallas import tpu as pltpu


def _round_up(x, m):
    return (x + m - 1) // m * m


# ----------------------------------------------------------------------------
# Fused Pallas kernel: whole MLP per batch tile
# ----------------------------------------------------------------------------
def _fused_mlp_kernel(*refs, n_layers):
    # refs = (x_ref, w0, b0, w1, b1, ..., w_{L-1}, b_{L-1}, o_ref)
    x_ref = refs[0]
    o_ref = refs[-1]
    wb_refs = refs[1:-1]

    h = x_ref[...]  # (TM, F_in) bf16 (cast in wrapper)
    for li in range(n_layers):
        w = wb_refs[2 * li][...]        # (d_in, d_out) bf16, VMEM resident
        b = wb_refs[2 * li + 1][...]    # (1, d_out)    f32
        # bf16 MXU matmul, f32 accumulation; epilogue stays f32.
        y = jnp.dot(h.astype(jnp.bfloat16), w,
                    preferred_element_type=jnp.float32) + b
        if li < n_layers - 1:
            h = jnp.maximum(y, 0.0)               # ReLU (VPU)
        else:
            h = 1.0 / (1.0 + jnp.exp(-y))         # exact sigmoid (EUP exp)
    o_ref[...] = h.astype(o_ref.dtype)


# ----------------------------------------------------------------------------
# One-time parameter packing (do NOT call per forward)
# ----------------------------------------------------------------------------
def prepare_params(params, *, lane_multiple=128):
    """Pack (in,out) f32 params for the kernel, once.

    * weights -> bf16, biases -> (1, out) f32
    * intermediate hidden widths zero-padded to a multiple of `lane_multiple`
      (exact: padded cols get zero weights + zero bias, ReLU(0)=0, and the
      next layer's padded input rows are zero).  First-layer input dim and
      last-layer output dim are never padded (they must match x).
    """
    n = len(params)
    packed = []
    prev_out_pad = 0
    for li, (w, b) in enumerate(params):
        d_in, d_out = w.shape
        out_pad = ((-d_out) % lane_multiple) if li < n - 1 else 0
        w = jnp.pad(w, ((0, prev_out_pad), (0, out_pad)))
        b = jnp.pad(b, (0, out_pad))
        packed.append((w.astype(jnp.bfloat16),
                       b.reshape(1, -1).astype(jnp.float32)))
        prev_out_pad = out_pad
    return packed


# ----------------------------------------------------------------------------
# Wrapper: flatten + bf16 cast in plain JAX, one fused pallas_call
# ----------------------------------------------------------------------------
def autoencoder_mlp_forward(packed_params, x, *, tile_m=512):
    """Pallas forward pass matching AutoencoderMLP.forward semantics.

    `packed_params` must come from prepare_params().
    """
    orig_shape = x.shape
    B = x.shape[0]
    h = x.reshape(B, -1).astype(jnp.bfloat16)     # x.view(B, -1), half the DMA bytes
    f_in = h.shape[1]
    f_out = packed_params[-1][0].shape[1]
    n_layers = len(packed_params)

    # Batch tile: multiple of 8 sublanes, large (amortize ~0.35us/step), but
    # capped at ceil(B/2) so there are >= 2 grid steps whenever B > 8
    # (gives v7x's two TensorCores something to split on the "parallel" axis).
    tm = min(tile_m, max(8, _round_up(pl.cdiv(B, 2), 8)))
    grid = (pl.cdiv(B, tm),)   # ragged last tile handled by masked partial blocks

    in_specs = [pl.BlockSpec((tm, f_in), lambda i: (i, 0))]
    wb_inputs = []
    for w, b in packed_params:
        d_in, d_out = w.shape
        wb_inputs.append(w)
        wb_inputs.append(b)
        # Grid-invariant full-block residents (constant index_map).
        # NOTE: for much larger archs, single-buffer these (pl.Buffered(1)) or
        # K-tile the biggest layer to stay under v7x's 64 MiB VMEM, and set
        # vmem_limit_bytes explicitly (v5e default scoped VMEM is only 16 MiB).
        in_specs.append(pl.BlockSpec((d_in, d_out), lambda i: (0, 0)))
        in_specs.append(pl.BlockSpec((1, d_out), lambda i: (0, 0)))

    out = pl.pallas_call(
        functools.partial(_fused_mlp_kernel, n_layers=n_layers),
        out_shape=jax.ShapeDtypeStruct((B, f_out), jnp.float32),
        grid=grid,
        in_specs=in_specs,
        out_specs=pl.BlockSpec((tm, f_out), lambda i: (i, 0)),
        compiler_params=pltpu.CompilerParams(
            # batch tiles are independent; v7x can shard them across its 2 TCs
            dimension_semantics=("parallel",),
        ),
    )(h, *wb_inputs)

    return out.reshape(orig_shape)               # h.view(x.shape)


# ----------------------------------------------------------------------------
# Parameter init (PyTorch-style Linear init) + pure-JAX reference
# ----------------------------------------------------------------------------
def init_autoencoder_params(key, net_arch):
    """Deterministic PyTorch-style Linear init: U(-1/sqrt(fan_in), 1/sqrt(fan_in))."""
    params = []
    for a, b_dim in zip(net_arch[:-1], net_arch[1:]):
        key, kw, kb = jax.random.split(key, 3)
        bound = 1.0 / jnp.sqrt(jnp.float32(a))
        # stored as (in, out)  ==  PyTorch weight (out, in) transposed
        w = jax.random.uniform(kw, (a, b_dim), jnp.float32, -bound, bound)
        bias = jax.random.uniform(kb, (b_dim,), jnp.float32, -bound, bound)
        params.append((w, bias))
    return params


def autoencoder_mlp_reference(params, x):
    """Pure-JAX f32 reference for correctness checking (unpacked params)."""
    orig_shape = x.shape
    h = x.reshape(x.shape[0], -1)
    for w, b in params[:-1]:
        h = jnp.maximum(h @ w + b, 0.0)
    w, b = params[-1]
    h = jax.nn.sigmoid(h @ w + b)
    return h.reshape(orig_shape)


if __name__ == "__main__":
    # Small, deterministic example:
    #   x: (B=8, C=1, H=16, W=16)  ->  flattened feature dim F = 256
    #   net_arch = [256, 128, 64, 128, 256]  (autoencoder: bottleneck 64)
    key = jax.random.PRNGKey(0)
    key_x, key_p, key_x2 = jax.random.split(key, 3)

    B, C, H, W = 8, 1, 16, 16
    net_arch = [C * H * W, 128, 64, 128, C * H * W]

    x = jax.random.normal(key_x, (B, C, H, W), dtype=jnp.float32)
    params = init_autoencoder_params(key_p, net_arch)
    packed = prepare_params(params)   # one-time: bf16, (1,out) biases, lane-padded

    fwd = jax.jit(autoencoder_mlp_forward)
    out = jax.block_until_ready(fwd(packed, x))
    ref = jax.block_until_ready(autoencoder_mlp_reference(params, x))
    assert out.shape == x.shape, (out.shape, x.shape)
    # bf16 matmul inputs -> loosened tolerance vs f32 reference
    assert jnp.allclose(out, ref, atol=2e-2, rtol=2e-2), "mismatch vs JAX reference"

    # Second check: ragged batch (B=20) -> multi-tile grid with a masked
    # partial last block (exercises the no-pad/no-slice path).
    x2 = jax.random.normal(key_x2, (20, C, H, W), dtype=jnp.float32)
    out2 = jax.block_until_ready(fwd(packed, x2))
    ref2 = jax.block_until_ready(autoencoder_mlp_reference(params, x2))
    assert out2.shape == x2.shape, (out2.shape, x2.shape)
    assert jnp.allclose(out2, ref2, atol=2e-2, rtol=2e-2), "mismatch (ragged batch)"

    print("KERNEL_OK")
</pallas_src>

<mosaic_0001>
module attributes {stable_mosaic.version = 11 : i64} {
  func.func @_fused_mlp_kernel(%arg0: i32, %arg1: memref<8x256xbf16, #tpu.memory_space<vmem>>, %arg2: memref<256x128xbf16, #tpu.memory_space<vmem>>, %arg3: memref<1x128xf32, #tpu.memory_space<vmem>>, %arg4: memref<128x128xbf16, #tpu.memory_space<vmem>>, %arg5: memref<1x128xf32, #tpu.memory_space<vmem>>, %arg6: memref<128x128xbf16, #tpu.memory_space<vmem>>, %arg7: memref<1x128xf32, #tpu.memory_space<vmem>>, %arg8: memref<128x256xbf16, #tpu.memory_space<vmem>>, %arg9: memref<1x256xf32, #tpu.memory_space<vmem>>, %arg10: memref<8x256xf32, #tpu.memory_space<vmem>>) attributes {dimension_semantics = [#tpu.dimension_semantics<parallel>], iteration_bounds = array<i64: 1>, scalar_prefetch = 0 : i64, scratch_operands = 0 : i64, tpu.core_type = #tpu.core_type<tc>, window_params = [{transform_indices = @transform_0, window_bounds = array<i64: 8, 256>}, {pipeline_mode = #tpu.pipeline_mode<synchronous>, transform_indices = @transform_1, window_bounds = array<i64: 256, 128>}, {pipeline_mode = #tpu.pipeline_mode<synchronous>, transform_indices = @transform_2, window_bounds = array<i64: 1, 128>}, {pipeline_mode = #tpu.pipeline_mode<synchronous>, transform_indices = @transform_3, window_bounds = array<i64: 128, 128>}, {pipeline_mode = #tpu.pipeline_mode<synchronous>, transform_indices = @transform_4, window_bounds = array<i64: 1, 128>}, {pipeline_mode = #tpu.pipeline_mode<synchronous>, transform_indices = @transform_5, window_bounds = array<i64: 128, 128>}, {pipeline_mode = #tpu.pipeline_mode<synchronous>, transform_indices = @transform_6, window_bounds = array<i64: 1, 128>}, {pipeline_mode = #tpu.pipeline_mode<synchronous>, transform_indices = @transform_7, window_bounds = array<i64: 128, 256>}, {pipeline_mode = #tpu.pipeline_mode<synchronous>, transform_indices = @transform_8, window_bounds = array<i64: 1, 256>}, {transform_indices = @transform_9, window_bounds = array<i64: 8, 256>}]} {
    %c0 = arith.constant 0 : index
    %c0_0 = arith.constant 0 : index
    %0 = vector.load %arg1[%c0, %c0_0] : memref<8x256xbf16, #tpu.memory_space<vmem>>, vector<8x256xbf16>
    %c0_1 = arith.constant 0 : index
    %c0_2 = arith.constant 0 : index
    %1 = vector.load %arg2[%c0_1, %c0_2] : memref<256x128xbf16, #tpu.memory_space<vmem>>, vector<256x128xbf16>
    %c0_3 = arith.constant 0 : index
    %c0_4 = arith.constant 0 : index
    %2 = vector.load %arg3[%c0_3, %c0_4] : memref<1x128xf32, #tpu.memory_space<vmem>>, vector<1x128xf32>
    %cst = arith.constant dense<0.000000e+00> : vector<8x128xf32>
    %3 = tpu.matmul %0, %1, %cst {dimension_numbers = #tpu.dot_dimension_numbers<[1], [0], [0], [1], [0, 0, 1, 1], [], []>} : vector<8x256xbf16>, vector<256x128xbf16>, vector<8x128xf32> -> vector<8x128xf32>
    %4 = vector.broadcast %2 : vector<1x128xf32> to vector<8x128xf32>
    %5 = arith.addf %3, %4 : vector<8x128xf32>
    %cst_5 = arith.constant 0.000000e+00 : f32
    %6 = vector.broadcast %cst_5 : f32 to vector<8x128xf32>
    %7 = arith.maximumf %5, %6 : vector<8x128xf32>
    %c0_6 = arith.constant 0 : index
    %c0_7 = arith.constant 0 : index
    %8 = vector.load %arg4[%c0_6, %c0_7] : memref<128x128xbf16, #tpu.memory_space<vmem>>, vector<128x128xbf16>
    %c0_8 = arith.constant 0 : index
    %c0_9 = arith.constant 0 : index
    %9 = vector.load %arg5[%c0_8, %c0_9] : memref<1x128xf32, #tpu.memory_space<vmem>>, vector<1x128xf32>
    %10 = arith.truncf %7 : vector<8x128xf32> to vector<8x128xbf16>
    %cst_10 = arith.constant dense<0.000000e+00> : vector<8x128xf32>
    %11 = tpu.matmul %10, %8, %cst_10 {dimension_numbers = #tpu.dot_dimension_numbers<[1], [0], [0], [1], [0, 0, 1, 1], [], []>} : vector<8x128xbf16>, vector<128x128xbf16>, vector<8x128xf32> -> vector<8x128xf32>
    %12 = vector.broadcast %9 : vector<1x128xf32> to vector<8x128xf32>
    %13 = arith.addf %11, %12 : vector<8x128xf32>
    %cst_11 = arith.constant 0.000000e+00 : f32
    %14 = vector.broadcast %cst_11 : f32 to vector<8x128xf32>
    %15 = arith.maximumf %13, %14 : vector<8x128xf32>
    %c0_12 = arith.constant 0 : index
    %c0_13 = arith.constant 0 : index
    %16 = vector.load %arg6[%c0_12, %c0_13] : memref<128x128xbf16, #tpu.memory_space<vmem>>, vector<128x128xbf16>
    %c0_14 = arith.constant 0 : index
    %c0_15 = arith.constant 0 : index
    %17 = vector.load %arg7[%c0_14, %c0_15] : memref<1x128xf32, #tpu.memory_space<vmem>>, vector<1x128xf32>
    %18 = arith.truncf %15 : vector<8x128xf32> to vector<8x128xbf16>
    %cst_16 = arith.constant dense<0.000000e+00> : vector<8x128xf32>
    %19 = tpu.matmul %18, %16, %cst_16 {dimension_numbers = #tpu.dot_dimension_numbers<[1], [0], [0], [1], [0, 0, 1, 1], [], []>} : vector<8x128xbf16>, vector<128x128xbf16>, vector<8x128xf32> -> vector<8x128xf32>
    %20 = vector.broadcast %17 : vector<1x128xf32> to vector<8x128xf32>
    %21 = arith.addf %19, %20 : vector<8x128xf32>
    %cst_17 = arith.constant 0.000000e+00 : f32
    %22 = vector.broadcast %cst_17 : f32 to vector<8x128xf32>
    %23 = arith.maximumf %21, %22 : vector<8x128xf32>
    %c0_18 = arith.constant 0 : index
    %c0_19 = arith.constant 0 : index
    %24 = vector.load %arg8[%c0_18, %c0_19] : memref<128x256xbf16, #tpu.memory_space<vmem>>, vector<128x256xbf16>
    %c0_20 = arith.constant 0 : index
    %c0_21 = arith.constant 0 : index
    %25 = vector.load %arg9[%c0_20, %c0_21] : memref<1x256xf32, #tpu.memory_space<vmem>>, vector<1x256xf32>
    %26 = arith.truncf %23 : vector<8x128xf32> to vector<8x128xbf16>
    %cst_22 = arith.constant dense<0.000000e+00> : vector<8x256xf32>
    %27 = tpu.matmul %26, %24, %cst_22 {dimension_numbers = #tpu.dot_dimension_numbers<[1], [0], [0], [1], [0, 0, 1, 1], [], []>} : vector<8x128xbf16>, vector<128x256xbf16>, vector<8x256xf32> -> vector<8x256xf32>
    %28 = vector.broadcast %25 : vector<1x256xf32> to vector<8x256xf32>
    %29 = arith.addf %27, %28 : vector<8x256xf32>
    %cst_23 = arith.constant 0.000000e+00 : f32
    %30 = vector.broadcast %cst_23 : f32 to vector<8x256xf32>
    %31 = arith.subf %30, %29 : vector<8x256xf32>
    %32 = math.exp %31 : vector<8x256xf32>
    %cst_24 = arith.constant 1.000000e+00 : f32
    %33 = vector.broadcast %cst_24 : f32 to vector<8x256xf32>
    %34 = arith.addf %33, %32 : vector<8x256xf32>
    %cst_25 = arith.constant 1.000000e+00 : f32
    %35 = vector.broadcast %cst_25 : f32 to vector<8x256xf32>
    %36 = arith.divf %35, %34 : vector<8x256xf32>
    %c0_26 = arith.constant 0 : index
    %c0_27 = arith.constant 0 : index
    %37 = vector.load %arg10[%c0_26, %c0_27] : memref<8x256xf32, #tpu.memory_space<vmem>>, vector<8x256xf32>
    tpu.vector_store %arg10[%c0_26, %c0_27], %36 {strides = array<i32>} : memref<8x256xf32, #tpu.memory_space<vmem>>, vector<8x256xf32>,
    return
  }
  func.func @transform_0(%arg0: i32) -> (i32, i32) {
    %c0_i32 = arith.constant 0 : i32
    %c0_i32_0 = arith.constant 0 : i32
    return %arg0, %c0_i32 : i32, i32
  }
  func.func @transform_1(%arg0: i32) -> (i32, i32) {
    %c0_i32 = arith.constant 0 : i32
    %c0_i32_0 = arith.constant 0 : i32
    %c0_i32_1 = arith.constant 0 : i32
    return %c0_i32, %c0_i32_0 : i32, i32
  }
  func.func @transform_2(%arg0: i32) -> (i32, i32) {
    %c0_i32 = arith.constant 0 : i32
    %c0_i32_0 = arith.constant 0 : i32
    %c0_i32_1 = arith.constant 0 : i32
    return %c0_i32, %c0_i32_0 : i32, i32
  }
  func.func @transform_3(%arg0: i32) -> (i32, i32) {
    %c0_i32 = arith.constant 0 : i32
    %c0_i32_0 = arith.constant 0 : i32
    %c0_i32_1 = arith.constant 0 : i32
    return %c0_i32, %c0_i32_0 : i32, i32
  }
  func.func @transform_4(%arg0: i32) -> (i32, i32) {
    %c0_i32 = arith.constant 0 : i32
    %c0_i32_0 = arith.constant 0 : i32
    %c0_i32_1 = arith.constant 0 : i32
    return %c0_i32, %c0_i32_0 : i32, i32
  }
  func.func @transform_5(%arg0: i32) -> (i32, i32) {
    %c0_i32 = arith.constant 0 : i32
    %c0_i32_0 = arith.constant 0 : i32
    %c0_i32_1 = arith.constant 0 : i32
    return %c0_i32, %c0_i32_0 : i32, i32
  }
  func.func @transform_6(%arg0: i32) -> (i32, i32) {
    %c0_i32 = arith.constant 0 : i32
    %c0_i32_0 = arith.constant 0 : i32
    %c0_i32_1 = arith.constant 0 : i32
    return %c0_i32, %c0_i32_0 : i32, i32
  }
  func.func @transform_7(%arg0: i32) -> (i32, i32) {
    %c0_i32 = arith.constant 0 : i32
    %c0_i32_0 = arith.constant 0 : i32
    %c0_i32_1 = arith.constant 0 : i32
    return %c0_i32, %c0_i32_0 : i32, i32
  }
  func.func @transform_8(%arg0: i32) -> (i32, i32) {
    %c0_i32 = arith.constant 0 : i32
    %c0_i32_0 = arith.constant 0 : i32
    %c0_i32_1 = arith.constant 0 : i32
    return %c0_i32, %c0_i32_0 : i32, i32
  }
  func.func @transform_9(%arg0: i32) -> (i32, i32) {
    %c0_i32 = arith.constant 0 : i32
    %c0_i32_0 = arith.constant 0 : i32
    return %arg0, %c0_i32 : i32, i32
  }
}

</mosaic_0001>

<bundles_post_ra>
// kernel: autoencoder_mlp_forward.1
= control target key start
LH: loop header
LB: loop body
LE: loop exit
PB: predicated region body
PF: predicated region fallthrough
CT: control target
= control target key end

     0   :  { %14 = vsyncpa [#allocation3], 0  ;;  %s1111_s0 = inlined_call_operand.vmem [shape: bf16[8,256], index: 0, kind: input, shape index: {}]   ;;  %s1112_s1 = inlined_call_operand.vmem [shape: bf16[256,128], index: 1, kind: input, shape index: {}]   ;;  %s1113_s2 = inlined_call_operand.vmem [shape: f32[1,128], index: 2, kind: input, shape index: {}]   ;;  %s1114_s3 = inlined_call_operand.hbm [shape: bf16[128,128], index: 3, kind: input, shape index: {}]   ;;  %s1115_s4 = inlined_call_operand.vmem [shape: f32[1,128], index: 4, kind: input, shape index: {}]   ;;  %s1116_s5 = inlined_call_operand.hbm [shape: bf16[128,128], index: 5, kind: input, shape index: {}]   ;;  %s1117_s6 = inlined_call_operand.vmem [shape: f32[1,128], index: 6, kind: input, shape index: {}]   ;;  %s1118_s7 = inlined_call_operand.vmem [shape: bf16[128,256], index: 7, kind: input, shape index: {}]   ;;  %s1119_s8 = inlined_call_operand.vmem [shape: f32[1,256], index: 8, kind: input, shape index: {}]   ;;  %s1120_s9 = inlined_call_operand.vmem [shape: f32[8,256], index: 9, kind: output, shape index: {}]  }
   0x1   :  { %15 = vsyncpa [#allocation5], 0  ;;  %s895_s30 = smov [#allocation2]   ;;  %s847_s13 = scalar_lea.hbm %s1114_s3, 1024 }
   0x2   :  { %s27_s10 = sshll.u32 %s895_s30, 4  ;;  %p848_p0 = scmp.ne.s32.totalorder %s1114_s3, %s847_s13  ;;  %s28_s10 = int_to_ptr.vmem [resolvable:$true] %s27_s10 }
   0x3   :  { %p851_p1 = scmp.lt.u32.totalorder %s847_s13, %s1114_s3 }
   0x5   :  { %p853_p2 = pnand %p851_p1, %p848_p0 }
   0x7   :  { %856 = shalt.err (!%p853_p2)
}
   0x8   :  { %s857_s18 = scalar_lea.vmem %s28_s10, 1024  ;;  %p862_p4 = scmp.lt.s32.totalorder %s28_s10, %s28_s10 }
   0x9   :  { %p858_p3 = scmp.ne.s32.totalorder %s28_s10, %s857_s18  ;;  %p863_p5 = scmp.lt.s32.totalorder %s857_s18, %s857_s18 }
   0xb   :  { %p864_p6 = por %p863_p5, %p862_p4 }
   0xd   :  { %p865_p7 = pnand %p864_p6, %p858_p3 }
   0xf   :  { %868 = shalt.err (!%p865_p7)
}
  0x10   :  { %s896_s19 = smov 64   ;;  %s897_s20 = smov 4  }
  0x11   :  { %33 = dma.hbm_to_vmem [thread:$0]  %s1114_s3, 1024, %s28_s10, [#allocation3], %s896_s19, %s896_s19, %s897_s20  }
  0x12   :  { %s898_s23 = smov [#allocation4]   ;;  %s869_s27 = scalar_lea.hbm %s1116_s5, 1024 }
  0x13   :  { %s41_s24 = sshll.u32 %s898_s23, 4  ;;  %p870_p8 = scmp.ne.s32.totalorder %s1116_s5, %s869_s27  ;;  %s42_s24 = int_to_ptr.vmem [resolvable:$true] %s41_s24 }
  0x14   :  { %p873_p9 = scmp.lt.u32.totalorder %s869_s27, %s1116_s5 }
  0x16   :  { %p875_p10 = pnand %p873_p9, %p870_p8 }
  0x18   :  { %878 = shalt.err (!%p875_p10)
}
  0x19   :  { %s879_s12 = scalar_lea.vmem %s42_s24, 1024  ;;  %p884_p12 = scmp.lt.s32.totalorder %s42_s24, %s42_s24 }
  0x1a   :  { %p880_p11 = scmp.ne.s32.totalorder %s42_s24, %s879_s12  ;;  %p885_p13 = scmp.lt.s32.totalorder %s879_s12, %s879_s12 }
  0x1c   :  { %p886_p0 = por %p885_p13, %p884_p12 }
  0x1e   :  { %p887_p1 = pnand %p886_p0, %p880_p11 }
  0x20   :  { %890 = shalt.err (!%p887_p1)
}
  0x21   :  { %47 = dma.hbm_to_vmem [thread:$0]  %s1116_s5, 1024, %s42_s24, [#allocation5], %s896_s19, %s896_s19, %s897_s20  }
  0x22   :  { %891 = dma.done.wait [#allocation3], 1024  }
  0x23   :  { %892 = vsyncadd [#allocation3], 4294966272 }
  0x24   :  { %893 = dma.done.wait [#allocation5], 1024  }
  0x25   :  { %894 = vsyncadd [#allocation5], 4294966272  ;;  %v899_v0 = vmov 0.0   ;;  %v781_v1 = vld [vmem:[%s1112_s1 + $0x40] sm:$0xff]   ;;  %v783_v3 = vld [vmem:[%s1112_s1 + $0x48] sm:$0xff]   ;;  %vm900_vm0 = vmmov 0  }
  0x26   :  { %734 = vmatprep.subr.bf16.mxu1 %v899_v0  ;;  %v782_v2 = vld [vmem:[%s1112_s1] sm:$0xff]   ;;  %694 = vmatprep.subr.bf16.mxu0 %v781_v1  ;;  %v784_v4 = vld [vmem:[%s1112_s1 + $0x8] sm:$0xff]   ;;  %v785_v5 = vld [vmem:[%s1112_s1 + $0x50] sm:$0xff]  }
  0x27   :  { %695 = vmatpush3.bf16.msra.mxu0 %v782_v2  ;;  %v786_v6 = vld [vmem:[%s1112_s1 + $0x10] sm:$0xff]   ;;  %v787_v7 = vld [vmem:[%s1112_s1 + $0x58] sm:$0xff]   ;;  %v789_v9 = vld [vmem:[%s1112_s1 + $0x60] sm:$0xff]   ;;  %750 = vmatprep.mubr.msk.bf16.mxu1 %vm900_vm0, %v899_v0 }
  0x28   :  { %696 = vmatprep.subr.bf16.mxu0 %v783_v3  ;;  %v788_v8 = vld [vmem:[%s1112_s1 + $0x18] sm:$0xff]   ;;  %v790_v10 = vld [vmem:[%s1112_s1 + $0x20] sm:$0xff]   ;;  %v791_v11 = vld [vmem:[%s1112_s1 + $0x68] sm:$0xff]  }
  0x29   :  { %v61_v12 = vld [vmem:[%s1111_s0] sm:$0xff]  ;;  %v792_v15 = vld [vmem:[%s1112_s1 + $0x28] sm:$0xff]   ;;  %v793_v16 = vld [vmem:[%s1112_s1 + $0x70] sm:$0xff]  }
  0x2a   :  { %v643_v13 = vcombine.high %v61_v12, %v61_v12  ;;  %v799_v14 = vld [vmem:[#allocation2] sm:$0xff]   ;;  %v800_v17 = vld [vmem:[#allocation2 + $0x8] sm:$0xff]   ;;  %v794_v18 = vld [vmem:[%s1112_s1 + $0x30] sm:$0xff]   ;;  %v642_v23 = vcombine.low %v61_v12, %v61_v12 }
  0x2b   :  { %697 = vmatpush3.bf16.msra.mxu0 %v784_v4  ;;  %735 = vmatpush3.bf16.msra.mxu1 %v799_v14  ;;  %v795_v19 = vld [vmem:[%s1112_s1 + $0x78] sm:$0xff]   ;;  %v801_v20 = vld [vmem:[#allocation2 + $0x10] sm:$0xff]   ;;  %v803_v24 = vld [vmem:[#allocation2 + $0x20] sm:$0xff]   ;;  %v490_v14 = vlaneseq }
  0x2c   :  { %698 = vmatprep.subr.bf16.mxu0 %v785_v5  ;;  %236 = vmatprep.mubr.bf16.mxu0 %v643_v13  ;;  %v796_v21 = vld [vmem:[%s1112_s1 + $0x38] sm:$0xff]   ;;  %v804_v25 = vld [vmem:[#allocation2 + $0x28] sm:$0xff]   ;;  %v805_v26 = vld [vmem:[#allocation2 + $0x30] sm:$0xff]   ;;  %v901_v5 = vmov 0  }
  0x2d   :  { %736 = vmatprep.subr.bf16.mxu1 %v899_v0  ;;  %v802_v22 = vld [vmem:[#allocation2 + $0x18] sm:$0xff]   ;;  %v807_v28 = vld [vmem:[#allocation4] sm:$0xff]   ;;  %v808_v29 = vld [vmem:[#allocation4 + $0x8] sm:$0xff]  }
  0x2e   :  { %v806_v27 = vld [vmem:[#allocation2 + $0x38] sm:$0xff]   ;;  %v809_v30 = vld [vmem:[#allocation4 + $0x10] sm:$0xff]   ;;  %v811_v32 = vld [vmem:[#allocation4 + $0x20] sm:$0xff]  }
  0x2f   :  { %699 = vmatpush3.bf16.msra.mxu0 %v786_v6  ;;  %737 = vmatpush3.bf16.msra.mxu1 %v800_v17  ;;  %v810_v31 = vld [vmem:[#allocation4 + $0x18] sm:$0xff]   ;;  %v812_v33 = vld [vmem:[#allocation4 + $0x28] sm:$0xff]   ;;  %v641_v35 = vld [vmem:[%s1113_s2] ss:$0 sm:$0xff] }
  0x30   :  { %700 = vmatprep.subr.bf16.mxu0 %v787_v7  ;;  %738 = vmatprep.subr.bf16.mxu1 %v899_v0  ;;  %v813_v43 = vld [vmem:[#allocation4 + $0x30] sm:$0xff]   ;;  %v814_v44 = vld [vmem:[#allocation4 + $0x38] sm:$0xff]   ;;  %v815_v45 = vld [vmem:[%s1118_s7] ss:$8 sps:$4 sm:$0xff]  }
  0x31   :  { %v817_v46 = vld [vmem:[%s1118_s7 + $0x4] ss:$8 sps:$4 sm:$0xff]   ;;  %v820_v47 = vld [vmem:[%s1118_s7 + $0x14] ss:$8 sps:$4 sm:$0xff]   ;;  %v818_v48 = vld [vmem:[%s1118_s7 + $0x10] ss:$8 sps:$4 sm:$0xff]  }
  0x32   :  { %v823_v49 = vld [vmem:[%s1118_s7 + $0x24] ss:$8 sps:$4 sm:$0xff]   ;;  %v821_v50 = vld [vmem:[%s1118_s7 + $0x20] ss:$8 sps:$4 sm:$0xff]   ;;  %v826_v51 = vld [vmem:[%s1118_s7 + $0x34] ss:$8 sps:$4 sm:$0xff]  }
  0x33   :  { %701 = vmatpush3.bf16.msra.mxu0 %v788_v8  ;;  %739 = vmatpush3.bf16.msra.mxu1 %v801_v20  ;;  %v824_v52 = vld [vmem:[%s1118_s7 + $0x30] ss:$8 sps:$4 sm:$0xff]   ;;  %v829_v53 = vld [vmem:[%s1118_s7 + $0x44] ss:$8 sps:$4 sm:$0xff]   ;;  %v827_v54 = vld [vmem:[%s1118_s7 + $0x40] ss:$8 sps:$4 sm:$0xff]  }
  0x34   :  { %702 = vmatprep.subr.bf16.mxu0 %v789_v9  ;;  %740 = vmatprep.subr.bf16.mxu1 %v899_v0  ;;  %v832_v55 = vld [vmem:[%s1118_s7 + $0x54] ss:$8 sps:$4 sm:$0xff]   ;;  %v830_v56 = vld [vmem:[%s1118_s7 + $0x50] ss:$8 sps:$4 sm:$0xff]   ;;  %v835_v57 = vld [vmem:[%s1118_s7 + $0x64] ss:$8 sps:$4 sm:$0xff]  }
  0x35   :  { %v833_v58 = vld [vmem:[%s1118_s7 + $0x60] ss:$8 sps:$4 sm:$0xff]   ;;  %v838_v3 = vld [vmem:[%s1118_s7 + $0x74] ss:$8 sps:$4 sm:$0xff]   ;;  %v836_v4 = vld [vmem:[%s1118_s7 + $0x70] ss:$8 sps:$4 sm:$0xff]  }
  0x36   :  { %v660_v59 = vld [vmem:[%s1115_s4] ss:$0 sm:$0xff] }
  0x37   :  { %703 = vmatpush3.bf16.msra.mxu0 %v790_v10  ;;  %741 = vmatpush3.bf16.msra.mxu1 %v802_v22  ;;  %v669_v6 = vld [vmem:[%s1117_s6] ss:$0 sm:$0xff] }
  0x38   :  { %704 = vmatprep.subr.bf16.mxu0 %v791_v11  ;;  %742 = vmatprep.subr.bf16.mxu1 %v899_v0  ;;  %v487_v17 = vld [vmem:[%s1119_s8] sm:$0x3] }
  0x3b   :  { %705 = vmatpush3.bf16.msra.mxu0 %v792_v15  ;;  %743 = vmatpush3.bf16.msra.mxu1 %v803_v24  ;;  %v491_v15 = vshrl.u32 %v490_v14, 7 }
  0x3c   :  { %706 = vmatprep.subr.bf16.mxu0 %v793_v16  ;;  %744 = vmatprep.subr.bf16.mxu1 %v899_v0 }
  0x3d   :  { %v492_v16 = vsub.s32 0, %v491_v15 }
  0x3f   :  { %707 = vmatpush3.bf16.msra.mxu0 %v794_v18  ;;  %745 = vmatpush3.bf16.msra.mxu1 %v804_v25  ;;  %v496_v18 = vsub.s32 1, %v491_v15 }
  0x40   :  { %708 = vmatprep.subr.bf16.mxu0 %v795_v19  ;;  %746 = vmatprep.subr.bf16.mxu1 %v899_v0  ;;  %v493_v19 = vrot.slane %v487_v17, %v492_v16 }
  0x41   :  { %v497_v20 = vrot.slane %v487_v17, %v496_v18 }
  0x43   :  { %709 = vmatpush3.bf16.msra.mxu0 %v796_v21  ;;  %747 = vmatpush3.bf16.msra.mxu1 %v805_v26 }
  0x44   :  { %754 = vmatprep.subr.bf16.mxu0 %v899_v0  ;;  %748 = vmatprep.subr.bf16.mxu1 %v899_v0 }
  0x46   :  { %237 = vmatmul.mubr.bf16.vlgmr.msra.gmra.mrb[0].mxu0 %v642_v23 }
  0x47   :  { %749 = vmatpush3.bf16.msra.mxu1 %v806_v27  ;;  %770 = vmatprep.mubr.msk.bf16.mxu0 %vm900_vm0, %v899_v0 }
  0x48   :  { %755 = vmatpush3.bf16.msra.mxu0 %v807_v28  ;;  %580 = vmatprep.subr.bf16.mxu1 %v817_v46 }
  0x49   :  { %756 = vmatprep.subr.bf16.mxu0 %v899_v0 }
  0x4c   :  { %757 = vmatpush3.bf16.msra.mxu0 %v808_v29 }
  0x4d   :  { %758 = vmatprep.subr.bf16.mxu0 %v899_v0 }
  0x50   :  { %759 = vmatpush3.bf16.msra.mxu0 %v809_v30 }
  0x51   :  { %760 = vmatprep.subr.bf16.mxu0 %v899_v0 }
  0x54   :  { %761 = vmatpush3.bf16.msra.mxu0 %v810_v31 }
  0x55   :  { %762 = vmatprep.subr.bf16.mxu0 %v899_v0 }
  0x58   :  { %763 = vmatpush3.bf16.msra.mxu0 %v811_v32 }
  0x59   :  { %764 = vmatprep.subr.bf16.mxu0 %v899_v0 }
  0x5c   :  { %765 = vmatpush3.bf16.msra.mxu0 %v812_v33 }
  0x5d   :  { %766 = vmatprep.subr.bf16.mxu0 %v899_v0 }
  0x60   :  { %767 = vmatpush3.bf16.msra.mxu0 %v813_v43 }
  0x61   :  { %768 = vmatprep.subr.bf16.mxu0 %v899_v0 }
  0x64   :  { %769 = vmatpush3.bf16.msra.mxu0 %v814_v44 }
 0x119   :  { %v710_v34 = vpop.f32.mrb[0].mxu0 }
 0x11a   :  { %v711_v36 = vpop.f32.mrb[1].mxu0 }
 0x11b   :  { %v712_v37 = vadd.f32 %v711_v36, %v710_v34  ;;  %v713_v38 = vpop.f32.mrb[2].mxu0 }
 0x11c   :  { %v714_v39 = vpop.f32.mrb[3].mxu0 }
 0x11d   :  { %v239_v40 = vadd.f32 %v712_v37, %v641_v35 }
 0x11f   :  { %v244_v41 = vmax.f32 %v239_v40, 0.0 }
 0x121   :  { %v262_v42 = vpack.c.bf16 %v244_v41, %v244_v41 }
 0x123   :  { %751 = vmatmul.mubr.bf16.vlgmr.msra.gmra.mrb[0].mxu1 %v262_v42 }
 0x124   :  { %581 = vmatpush1.bf16.msra.mxu1 %v815_v45  ;;  %612 = vmatprep.mubr.bf16.mxu1 %v901_v5 }
 0x125   :  { %582 = vmatprep.subr.bf16.mxu1 %v820_v47 }
 0x128   :  { %583 = vmatpush1.bf16.msra.mxu1 %v818_v48 }
 0x129   :  { %584 = vmatprep.subr.bf16.mxu1 %v823_v49 }
 0x12c   :  { %585 = vmatpush1.bf16.msra.mxu1 %v821_v50 }
 0x12d   :  { %586 = vmatprep.subr.bf16.mxu1 %v826_v51 }
 0x130   :  { %587 = vmatpush1.bf16.msra.mxu1 %v824_v52 }
 0x131   :  { %588 = vmatprep.subr.bf16.mxu1 %v829_v53 }
 0x134   :  { %589 = vmatpush1.bf16.msra.mxu1 %v827_v54 }
 0x135   :  { %590 = vmatprep.subr.bf16.mxu1 %v832_v55 }
 0x138   :  { %591 = vmatpush1.bf16.msra.mxu1 %v830_v56 }
 0x139   :  { %592 = vmatprep.subr.bf16.mxu1 %v835_v57 }
 0x13c   :  { %593 = vmatpush1.bf16.msra.mxu1 %v833_v58 }
 0x13d   :  { %594 = vmatprep.subr.bf16.mxu1 %v838_v3 }
 0x140   :  { %595 = vmatpush1.bf16.msra.mxu1 %v836_v4 }
 0x1f6   :  { %v351_v60 = vpop.f32.mrb[0].mxu1 }
 0x1f7   :  { %v352_v61 = vadd.f32 %v660_v59, %v351_v60  ;;  %v752_v62 = vpop.f32.mrb[1].mxu1 }
 0x1f8   :  { %v354_v63 = vpop.f32.mrb[2].mxu1 }
 0x1f9   :  { %v357_v0 = vmax.f32 %v352_v61, 0.0  ;;  %v753_v1 = vpop.f32.mrb[3].mxu1 }
 0x1fb   :  { %v375_v2 = vpack.c.bf16 %v357_v0, %v357_v0 }
 0x1fd   :  { %771 = vmatmul.mubr.bf16.vlgmr.msra.gmra.mrb[4].mxu0 %v375_v2 }
 0x2d0   :  { %v464_v7 = vpop.f32.mrb[4].mxu0 }
 0x2d1   :  { %v465_v8 = vadd.f32 %v669_v6, %v464_v7  ;;  %v772_v9 = vpop.f32.mrb[5].mxu0 }
 0x2d2   :  { %v467_v10 = vpop.f32.mrb[6].mxu0 }
 0x2d3   :  { %v470_v11 = vmax.f32 %v465_v8, 0.0  ;;  %v773_v12 = vpop.f32.mrb[7].mxu0 }
 0x2d5   :  { %v488_v13 = vpack.c.bf16 %v470_v11, %v470_v11 }
 0x2d7   :  { %613 = vmatmul.mubr.bf16.vlgmr.msra.gmra.mrb[4].mxu1 %v488_v13 }
 0x3aa   :  { %v614_v21 = vpop.f32.mrb[4].mxu1 }
 0x3ab   :  { %v615_v22 = vadd.f32 %v614_v21, %v493_v19  ;;  %v616_v23 = vpop.f32.mrb[5].mxu1 }
 0x3ac   :  { %v617_v24 = vadd.f32 %v616_v23, %v497_v20  ;;  %v618_v25 = vpop.f32.mrb[6].mxu1 }
 0x3ad   :  { %v621_v26 = vsub.f32 0.0, %v615_v22  ;;  %v619_v27 = vpop.f32.mrb[7].mxu1 }
 0x3ae   :  { %v622_v28 = vsub.f32 0.0, %v617_v24 }
 0x3af   :  { %v623_v29 = vmul.f32 1.442695, %v621_v26 }
 0x3b0   :  { %v625_v30 = vmul.f32 1.442695, %v622_v28 }
 0x3b1   :  { %839 = vpow2.f32 %v623_v29 }
 0x3b2   :  { %841 = vpow2.f32 %v625_v30 }
 0x3bb   :  { %v840_v31 = vpop.eup %839 }
 0x3bc   :  { %v842_v32 = vpop.eup %841  ;;  %v627_v33 = vadd.f32 1.0, %v840_v31 }
 0x3bd   :  { %v628_v34 = vadd.f32 1.0, %v842_v32 }
 0x3be   :  { %843 = vrcp.f32 %v627_v33 }
 0x3bf   :  { %845 = vrcp.f32 %v628_v34 }
 0x3c8   :  { %v844_v35 = vpop.eup %843 }
 0x3c9   :  { %v846_v36 = vpop.eup %845  ;;  %633 = vst [vmem:[%s1120_s9] sm:$0xff] %v844_v35 }
 0x3ca   :  { %634 = vst [vmem:[%s1120_s9 + $0x8] sm:$0xff] %v846_v36 }
 0x3cb   :  { %639 = vsyncpa [#allocation3], 1 }
 0x3cc   :  { %640 = vsyncpa [#allocation5], 1 }

</bundles_post_ra>
